<compile_context>
chip_gen: v7x
topology: tpu7x:2x2x1
jax: 0.10.0
libtpu: 0.0.40
codegen_flags: <defaults>
</compile_context>

<pallas_src>
import jax
import jax.numpy as jnp
from jax.experimental import pallas as pl
from jax.experimental.pallas import tpu as pltpu

_MIN_PALLAS_BYTES = 256 * 1024            # below this, plain jnp beats a kernel launch
_TARGET_IN_TILE_BYTES = 4 * 1024 * 1024   # ~4 MiB input tile ~ 85% of HBM roofline


def _round_up(x: int, m: int) -> int:
    return ((x + m - 1) // m) * m


def harden_kernel(x_ref, o_ref):
    x = x_ref[...]                                           # (bn, C)
    c = x.shape[-1]
    # argmax over the lane (class) axis, first occurrence on ties (torch.max
    # semantics): lane-max, then min over the iota of the max positions.
    # The two XLU reductions are free filler under the HBM stream.
    # NOTE: a row containing NaN yields an all-zero one-hot here (x == m is
    # false everywhere); torch.max would place the 1 at the NaN's index.
    # TODO(synk): NaN-propagating argmax if NaN inputs must match torch exactly.
    m = jnp.max(x, axis=-1, keepdims=True)                   # (bn, 1)
    col = jax.lax.broadcasted_iota(jnp.int32, x.shape, 1)    # lane index
    masked = jnp.where(x == m, col, c)                       # non-max -> sentinel c
    first = jnp.min(masked, axis=-1, keepdims=True)          # first argmax
    o_ref[...] = (col == first).astype(jnp.float32)          # one-hot, float32


def _chip_policy():
    """Returns (vmem_ceiling_bytes, dual_tensorcore) for the attached chip."""
    try:
        info = pltpu.get_tpu_info()
        vmem_phys = int(getattr(info, "vmem_capacity_bytes", 0)) or (64 << 20)
    except Exception:
        vmem_phys = 64 << 20                       # conservative (v7x-like) fallback
    dual_tc = vmem_phys <= (64 << 20)              # v7x: 64 MiB / TC, 2 TCs
    ceiling = (48 << 20) if dual_tc else (96 << 20)  # v5e/v6e: 128 MiB physical
    return ceiling, dual_tc


def _sublane(in_itemsize: int) -> int:
    # Packed-sublane quantum: 8 for 4-byte, 16 for 2-byte, 32 for 1-byte dtypes;
    # the f32 output needs at least 8, which max() guarantees.
    return max(8, 32 // max(1, in_itemsize))


def _pick_block_rows(n_rows: int, c: int, in_itemsize: int,
                     ceiling: int, dual_tc: bool) -> int:
    sub = _sublane(in_itemsize)
    per_row_in = c * in_itemsize
    per_row_all = 2 * c * (in_itemsize + 4)        # (in + f32 out), double-buffered
    # Bytes-based target (~4 MiB input tile), capped by the VMEM budget and N.
    br = max(1, _TARGET_IN_TILE_BYTES // per_row_in)
    br = min(br, max(1, (ceiling - (8 << 20)) // per_row_all))
    br = min(br, _round_up(n_rows, sub))
    if dual_tc and n_rows > sub:
        # >=4 grid steps so each of the 2 TensorCores has >=2 steps to pipeline.
        br = min(br, _round_up(pl.cdiv(n_rows, 4), sub))
    return max(sub, (br // sub) * sub)


def harden(vec: jax.Array, *, block_rows: int | None = None,
           force_pallas: bool = False) -> jax.Array:
    """float32 one-hot of argmax along axis 1. vec: (N, C) -> (N, C) float32."""
    N, C = vec.shape

    # Tiny inputs: kernel launch + DMA setup dwarfs the work; let XLA fuse it.
    if not force_pallas and vec.size * jnp.dtype(vec.dtype).itemsize < _MIN_PALLAS_BYTES:
        return jax.nn.one_hot(jnp.argmax(vec, axis=1), C, dtype=jnp.float32)

    ceiling, dual_tc = _chip_policy()
    itemsize = jnp.dtype(vec.dtype).itemsize
    sub = _sublane(itemsize)

    if block_rows is None:
        block_rows = _pick_block_rows(N, C, itemsize, ceiling, dual_tc)
    block_rows = max(sub, _round_up(block_rows, sub))

    # Scoped VMEM: never below the actual double-buffered footprint (+headroom),
    # clamped to the per-generation ceiling (48 MiB v7x, 96 MiB v5e/v6e).
    footprint = 2 * block_rows * C * (itemsize + 4)
    vmem_limit = min(ceiling, max(32 << 20, footprint + (8 << 20)))

    return pl.pallas_call(
        harden_kernel,
        out_shape=jax.ShapeDtypeStruct((N, C), jnp.float32),
        grid_spec=pltpu.PrefetchScalarGridSpec(
            num_scalar_prefetch=0,
            grid=(pl.cdiv(N, block_rows),),
            # Last block dim == full array dim C: legal even when C % 128 != 0;
            # avoids any wrapper-side pad/slice passes over HBM.
            in_specs=[pl.BlockSpec((block_rows, C), lambda i: (i, 0))],
            out_specs=pl.BlockSpec((block_rows, C), lambda i: (i, 0)),
        ),
        compiler_params=pltpu.CompilerParams(
            dimension_semantics=("parallel",),
            vmem_limit_bytes=vmem_limit,
        ),
    )(vec)


if __name__ == "__main__":
    key = jax.random.PRNGKey(0)

    # Small but deliberately awkward shape: N not a tile multiple and C not a
    # multiple of 128, exercising the ragged grid and ragged-lane reductions.
    N, C = 50, 20
    x = jax.random.normal(key, (N, C), dtype=jnp.float32)
    y = jax.block_until_ready(harden(x, force_pallas=True))
    ref = jax.nn.one_hot(jnp.argmax(x, axis=1), C, dtype=jnp.float32)
    assert y.shape == (N, C) and y.dtype == jnp.float32
    assert jnp.array_equal(y, ref), "mismatch vs reference one-hot (small case)"

    # Larger case exercising multiple grid steps (and the dual-TC split on v7x).
    N2, C2 = 300, 200
    x2 = jax.random.normal(jax.random.PRNGKey(1), (N2, C2), dtype=jnp.float32)
    y2 = jax.block_until_ready(harden(x2, force_pallas=True))
    ref2 = jax.nn.one_hot(jnp.argmax(x2, axis=1), C2, dtype=jnp.float32)
    assert jnp.array_equal(y2, ref2), "mismatch vs reference one-hot (multi-step case)"

    # Tie-breaking check: first (lowest-index) max wins, matching torch.max.
    x_tie = jnp.array([[1.0, 3.0, 3.0, 2.0],
                       [5.0, 5.0, 5.0, 5.0]], dtype=jnp.float32)
    y_tie = jax.block_until_ready(harden(x_tie, force_pallas=True))
    ref_tie = jnp.array([[0.0, 1.0, 0.0, 0.0],
                         [1.0, 0.0, 0.0, 0.0]], dtype=jnp.float32)
    assert jnp.array_equal(y_tie, ref_tie), "tie-breaking mismatch"

    print("KERNEL_OK")
</pallas_src>

<mosaic_0001>
module attributes {stable_mosaic.version = 11 : i64} {
  func.func @harden_kernel(%arg0: i32, %arg1: memref<16x20xf32, #tpu.memory_space<vmem>>, %arg2: memref<16x20xf32, #tpu.memory_space<vmem>>) attributes {dimension_semantics = [#tpu.dimension_semantics<parallel>], iteration_bounds = array<i64: 4>, scalar_prefetch = 0 : i64, scratch_operands = 0 : i64, tpu.core_type = #tpu.core_type<tc>, window_params = [{transform_indices = @transform_0, window_bounds = array<i64: 16, 20>}, {transform_indices = @transform_1, window_bounds = array<i64: 16, 20>}]} {
    %c0 = arith.constant 0 : index
    %c0_0 = arith.constant 0 : index
    %0 = vector.load %arg1[%c0, %c0_0] : memref<16x20xf32, #tpu.memory_space<vmem>>, vector<16x20xf32>
    %cst = arith.constant dense<0xFF800000> : vector<16xf32>
    %1 = vector.multi_reduction <maximumf>, %0, %cst [1] : vector<16x20xf32> to vector<16xf32>
    %2 = vector.shape_cast %1 : vector<16xf32> to vector<16x1xf32>
    %3 = tpu.iota {dimensions = array<i32: 1>} : vector<16x20xi32>
    %4 = vector.broadcast %2 : vector<16x1xf32> to vector<16x20xf32>
    %5 = arith.cmpf oeq, %0, %4 : vector<16x20xf32>
    %c20_i32 = arith.constant 20 : i32
    %6 = vector.broadcast %c20_i32 : i32 to vector<16x20xi32>
    %7 = arith.select %5, %3, %6 : vector<16x20xi1>, vector<16x20xi32>
    %cst_1 = arith.constant dense<2147483647> : vector<16xi32>
    %8 = vector.multi_reduction <minsi>, %7, %cst_1 [1] : vector<16x20xi32> to vector<16xi32>
    %9 = vector.shape_cast %8 : vector<16xi32> to vector<16x1xi32>
    %10 = vector.broadcast %9 : vector<16x1xi32> to vector<16x20xi32>
    %11 = arith.cmpi eq, %3, %10 : vector<16x20xi32>
    %12 = arith.extui %11 : vector<16x20xi1> to vector<16x20xi32>
    %13 = arith.sitofp %12 : vector<16x20xi32> to vector<16x20xf32>
    %c0_2 = arith.constant 0 : index
    %c0_3 = arith.constant 0 : index
    %14 = vector.load %arg2[%c0_2, %c0_3] : memref<16x20xf32, #tpu.memory_space<vmem>>, vector<16x20xf32>
    tpu.vector_store %arg2[%c0_2, %c0_3], %13 {strides = array<i32>} : memref<16x20xf32, #tpu.memory_space<vmem>>, vector<16x20xf32>,
    return
  }
  func.func @transform_0(%arg0: i32) -> (i32, i32) {
    %c0_i32 = arith.constant 0 : i32
    %c0_i32_0 = arith.constant 0 : i32
    return %arg0, %c0_i32 : i32, i32
  }
  func.func @transform_1(%arg0: i32) -> (i32, i32) {
    %c0_i32 = arith.constant 0 : i32
    %c0_i32_0 = arith.constant 0 : i32
    return %arg0, %c0_i32 : i32, i32
  }
}

</mosaic_0001>

<bundles_post_ra>
// kernel: tpu_custom_call.1
= control target key start
LH: loop header
LB: loop body
LE: loop exit
PB: predicated region body
PF: predicated region fallthrough
CT: control target
= control target key end

     0   :  { %s627_s6 = smov 0   ;;  %s629_s7 = smov 0   ;;  %s716_s0 = inlined_call_operand.vmem [shape: f32[50,20], index: 0, kind: input, shape index: {}]   ;;  %s717_s1 = inlined_call_operand.vmem [shape: f32[50,20], index: 1, kind: output, shape index: {}]  }
   0x1   :  { %s631_s8 = smov 0  }
   0x2 LB: > { %s640_s9 = sadd.s32 4294967295, %s582_s8   ;;  %s642_s10 = sadd.s32 1, %s582_s8   ;;  %s582_s8 = sphi %s631_s8, %s721_s8   ;;  %s578_s7 = sphi %s629_s7, %s720_s7   ;;  %s574_s6 = sphi %s627_s6, %s719_s6  }
   0x3   : > { %s41_s11 = ssub.s32 %s582_s8, %s642_s10  ;;  %s44_s12 = sadd.s32 1, %s578_s7 }
   0x4   : > { %p42_p0 = scmp.eq.s32.totalorder %s41_s11, 0  ;;  %p54_p1 = scmp.ne.s32.totalorder %s578_s7, %s574_s6 }
   0x5   : > { %p55_p2 = scmp.eq.s32.totalorder %s640_s9, 3  ;;  %p413_p3 = scmp.ge.s32.totalorder %s582_s8, 1 }
   0x6   : > { %s650_s13 = scalar_select %p42_p0, %s578_s7, %s44_s12  }
   0x7   : > { %p652_p4 = por %p55_p2, %p54_p1  ;;  %p96_p5 = scmp.lt.s32.totalorder %s582_s8, 5 }
   0x9   : > { %p97_p6 = pnand %p413_p3, %p96_p5 }
   0xa   : > { %s657_s15 = sshll.u32 (!%p97_p6), %s640_s9, 1  ;;  %vm140_vm0 = vcmask (!%p97_p6), 162816   ;;  %v147_v4 = vlaneseq (!%p97_p6)  ;;  %s116_s21 = sand.u32 (!%p97_p6), 1, %s574_s6   ;;  %v616_v33 = vmov (!%p97_p6), 0.0  }
   0xb   : > { %100 = sbr.rel (%p97_p6) target bundleno = 519 (0x207), region = 24  ;;  %p124_p7 = scmp.lt.s32.totalorder (!%p97_p6), %s657_s15, 6 }
   0xc   : > { %v148_v5 = vand.u32 (!%p97_p6), 127, %v147_v4  ;;  %s414_s22 = sshll.u32 (!%p97_p6), %s116_s21, 4 }
   0xd   : > { %s669_s23 = scalar_lea.vmem (!%p97_p6), [#allocation2], %s414_s22  }
  0x12   : > { %s125_s16 = scalar_select %p124_p7, %s657_s15, 6 }
  0x13   : > { %s199_s24 = ssub.s32 (%p652_p4), 7, %s657_s15  ;;  %s436_s25 = sshll.u32 (%p652_p4), %s640_s9, 4 }
  0x14   : > { %s416_s17 = sshll.u32 %s125_s16, 3  ;;  %p200_p8 = scmp.lt.s32.totalorder (%p652_p4), %s199_s24, 2 }
  0x15   : > { %s127_s20 = scalar_lea.vmem %s716_s0, %s416_s17  ;;  %s682_s28 = scalar_lea.vmem (%p652_p4), %s717_s1, %s436_s25  }
  0x16   : > { %v138_v0 = vld [vmem:[%s127_s20] sm:$0xff]  ;;  %v139_v1 = vld [vmem:[%s127_s20 + $0x8] sm:$0xff] }
  0x17   : > { %v141_v2 = vsel %vm140_vm0, %v138_v0, -inf  ;;  %v144_v3 = vsel %vm140_vm0, %v139_v1, -inf }
  0x18   : > { %142 = vmax.xlane.f32.xlu0 %v141_v2 }
  0x1c   : > { %145 = vmax.xlane.f32.xlu0 %v144_v3 }
  0xa5   : > { %v143_v6 = vpop.xlane.xlu0 %142 }
  0xa6   : > { %vm149_vm1 = vcmp.eq.f32.partialorder %v138_v0, %v143_v6 }
  0xa7   : > { %v151_v7 = vsel %vm149_vm1, %v148_v5, 20 }
  0xa8   : > { %v153_v8 = vsel %vm140_vm0, %v151_v7, 2147483647 }
  0xa9   : > { %v146_v9 = vpop.xlane.xlu0 %145  ;;  %v155_v10 = vshra.s32 %v153_v8, 16  ;;  %v154_v16 = vand.u32 65535, %v153_v8 }
  0xaa   : > { %vm150_vm2 = vcmp.eq.f32.partialorder %v139_v1, %v146_v9 }
  0xab   : > { %v152_v11 = vsel %vm150_vm2, %v148_v5, 20  ;;  %v157_v12 = vcvt.s32.f32 %v155_v10  ;;  %v156_v18 = vcvt.s32.f32 %v154_v16 }
  0xac   : > { %v168_v13 = vsel %vm140_vm0, %v152_v11, 2147483647 }
  0xad   : > { %158 = vmin.xlane.f32.xlu1 %v157_v12  ;;  %v170_v14 = vshra.s32 %v168_v13, 16  ;;  %v169_v19 = vand.u32 65535, %v168_v13 }
  0xaf   : > { %v172_v15 = vcvt.s32.f32 %v170_v14  ;;  %v171_v22 = vcvt.s32.f32 %v169_v19 }
  0xb1   : > { %173 = vmin.xlane.f32.xlu1 %v172_v15 }
 0x13a   : > { %v159_v17 = vpop.xlane.xlu1 %158 }
 0x13b   : > { %vm160_vm3 = vcmp.eq.f32.partialorder %v157_v12, %v159_v17  ;;  %v165_v24 = vcvt.f32.s32 %v159_v17 }
 0x13c   : > { %v161_v20 = vsel %vm160_vm3, %v156_v18, inf }
 0x13d   : > { %162 = vmin.xlane.f32.xlu0 %v161_v20  ;;  %v166_v26 = vshll.u32 %v165_v24, 16 }
 0x13e   : > { %v174_v21 = vpop.xlane.xlu1 %173 }
 0x13f   : > { %vm175_vm4 = vcmp.eq.f32.partialorder %v172_v15, %v174_v21  ;;  %v180_v27 = vcvt.f32.s32 %v174_v21 }
 0x140   : > { %v176_v23 = vsel %vm175_vm4, %v171_v22, inf }
 0x141   : > { %177 = vmin.xlane.f32.xlu1 %v176_v23  ;;  %v181_v31 = vshll.u32 %v180_v27, 16 }
 0x1ca   : > { %v163_v25 = vpop.xlane.xlu0 %162 }
 0x1cb   : > { %v164_v28 = vcvt.f32.s32 %v163_v25 }
 0x1cd   : > { %v167_v29 = vadd.s32 %v166_v26, %v164_v28 }
 0x1ce   : > { %v178_v30 = vpop.xlane.xlu1 %177 }
 0x1cf   : > { %vm183_vm5 = vcmp.eq.s32.totalorder %v148_v5, %v167_v29  ;;  %v179_v32 = vcvt.f32.s32 %v178_v30  ;;  %197 = sbr.rel (!%p652_p4) target bundleno = 519 (0x207), region = 28 }
 0x1d0   : > { %v417_v34 = vsel %vm183_vm5, 1.0, %v616_v33 }
 0x1d1   : > { %189 = vst.msk [vmem:[%s669_s23] sm:$0xff] %vm140_vm0, %v417_v34  ;;  %v182_v35 = vadd.s32 %v181_v31, %v179_v32 }
 0x1d3   : > { %vm184_vm6 = vcmp.eq.s32.totalorder %v148_v5, %v182_v35 }
 0x1d4   : > { %v418_v36 = vsel %vm184_vm6, 1.0, %v616_v33 }
 0x1d5   : > { %190 = vst.msk [vmem:[%s669_s23 + $0x8] sm:$0xff] %vm140_vm0, %v418_v36 }
 0x1d6   : > { %s723_s24 = smov (!%p200_p8, %s199_s24), 2 }
 0x1d7   : > { %s421_s29 = sshll.u32 %s723_s24, 7 }
 0x1d8   : > { %p424_p9 = scmp.eq.s32.totalorder %s421_s29, 0 }
 0x1d9   : > { %s688_s30 = sshrl.u32 (!%p424_p9), %s723_s24, 1 }
 0x1da   : > { %208 = sbr.rel (%p424_p9) target bundleno = 519 (0x207), region = 32  ;;  %p425_p10 = scmp.le.s32.totalorder (!%p424_p9), %s688_s30, 0 }
 0x1e1   : > { %366 = sbr.rel (%p425_p10) target bundleno = 498 (0x1f2), region = 108  ;;  %s584_s2 = smov (!%p425_p10), %s682_s28  }
 0x1e2   : > { %s588_s3 = smov (!%p425_p10), %s669_s23   ;;  %s592_s4 = smov (!%p425_p10), 0  }
 0x1e3   : > { %s596_s5 = smov (!%p425_p10), 0  }
 0x1e8 LB: >> { %v272_v37 = vld [vmem:[%s590_s3] sm:$0xff]  ;;  %v274_v38 = vld [vmem:[%s590_s3 + $0x8] sm:$0xff]  ;;  %s276_s6 = sadd.s32 1, %s594_s4  ;;  %s266_s5 = sadd.s32 1, %s598_s5   ;;  %s598_s5 = sphi %s596_s5, %s266_s5   ;;  %s594_s4 = sphi %s592_s4, %s593_s4   ;;  %s590_s3 = sphi %s588_s3, %s281_s3   ;;  %s586_s2 = sphi %s584_s2, %s282_s2  }
 0x1e9   : >> { %273 = vst [vmem:[%s586_s2] sm:$0xff] %v272_v37  ;;  %275 = vst [vmem:[%s586_s2 + $0x8] sm:$0xff] %v274_v38  ;;  %p277_p11 = scmp.ge.s32.totalorder %s276_s6, %s688_s30  ;;  %p265_p12 = scmp.ge.s32.totalorder %s266_s5, %s688_s30 }
 0x1eb   : >> { %s725_s6 = smov (%p277_p11, %s276_s6), 0  ;;  %268 = sbr.rel (!%p265_p12) target bundleno = 488 (0x1e8), region = 114 }
 0x1ec   : >> { %s426_s8 = sshll.u32 %s725_s6, 4  ;;  %s593_s4 = smov %s725_s6  }
 0x1ed   : >> { %s281_s3 = scalar_lea.vmem %s669_s23, %s426_s8 [#allocation2]   ;;  %s282_s2 = scalar_lea.vmem %s682_s28, %s426_s8  }
 0x1f2 PF: > { %s698_s9 = sand.u32 1, %s723_s24   ;;  %s437_s11 = sshll.u32 %s688_s30, 4 }
 0x1f3   : > { %s287_s12 = scalar_lea.vmem %s669_s23, %s437_s11 [#allocation2]   ;;  %s289_s14 = scalar_lea.vmem %s682_s28, %s437_s11  }
 0x1f4   : > { %p431_p13 = scmp.le.s32.totalorder %s698_s9, 0 }
 0x1f5   : > { %s600_s15 = smov (!%p431_p13), %s289_s14   ;;  %s604_s16 = smov (!%p431_p13), %s287_s12  }
 0x1f6   : > { %380 = sbr.rel (%p431_p13) target bundleno = 519 (0x207), region = 119  ;;  %s608_s17 = smov (!%p431_p13), 0  }
 0x1f7   : > { %s612_s18 = smov (!%p431_p13), 0  }
 0x1fd LB: >> { %v299_v39 = vld [vmem:[%s606_s16] sm:$0xff]  ;;  %s301_s19 = sadd.s32 1, %s610_s17  ;;  %s293_s18 = sadd.s32 1, %s614_s18   ;;  %s614_s18 = sphi %s612_s18, %s293_s18   ;;  %s610_s17 = sphi %s608_s17, %s609_s17   ;;  %s606_s16 = sphi %s604_s16, %s306_s16   ;;  %s602_s15 = sphi %s600_s15, %s307_s15  }
 0x1fe   : >> { %300 = vst [vmem:[%s602_s15] sm:$0xff] %v299_v39  ;;  %p302_p0 = scmp.ge.s32.totalorder %s301_s19, %s698_s9  ;;  %p292_p1 = scmp.ge.s32.totalorder %s293_s18, %s698_s9 }
 0x200   : >> { %s727_s19 = smov (%p302_p0, %s301_s19), 0  ;;  %295 = sbr.rel (!%p292_p1) target bundleno = 509 (0x1fd), region = 125 }
 0x201   : >> { %s432_s20 = sshll.u32 %s727_s19, 3  ;;  %s609_s17 = smov %s727_s19  }
 0x202   : >> { %s306_s16 = scalar_lea.vmem %s287_s12, %s432_s20 [#allocation2]   ;;  %s307_s15 = scalar_lea.vmem %s289_s14, %s432_s20  }
 0x207 PF: > { %p8_p2 = scmp.ge.s32.totalorder %s642_s10, 6   ;;  %s719_s6 = smov %s578_s7 }
 0x208   : > { %s720_s7 = smov %s650_s13  ;;  %s721_s8 = smov %s642_s10 }
 0x209   :  { %10 = sbr.rel (!%p8_p2) target bundleno = 2 (0x2), region = 136 }

</bundles_post_ra>
